<compile_context>
chip_gen: v5e
topology: v5e:2x2
jax: 0.10.0
libtpu: 0.0.40
codegen_flags: <defaults>
</compile_context>

<pallas_src>
import jax
import jax.numpy as jnp
from jax.experimental import pallas as pl
from jax.experimental.pallas import tpu as pltpu


def _identity_alias_kernel(x_hbm_ref, o_hbm_ref, done_ref):
    # The output aliases the input HBM buffer, so the identity result is
    # already in place: no DMA, no vector load/store of tensor data.
    # The one-word SMEM store just keeps the lowered kernel body non-empty;
    # its cost is negligible (a single scalar store).
    del x_hbm_ref, o_hbm_ref
    done_ref[0] = jnp.int32(1)


def posterior_encoder_forward(x):
    """Identity forward pass of PosteriorEncoder as a zero-traffic Pallas call.

    Valid for any input shape/dtype: both refs remain in HBM (pl.ANY) and the
    output aliases the input (input_output_aliases={0: 0}), so the kernel
    itself reads/writes no tensor data.
    """
    return pl.pallas_call(
        _identity_alias_kernel,
        out_shape=jax.ShapeDtypeStruct(x.shape, x.dtype),
        in_specs=[pl.BlockSpec(memory_space=pl.ANY)],
        out_specs=pl.BlockSpec(memory_space=pl.ANY),
        scratch_shapes=[pltpu.SMEM((1,), jnp.int32)],
        input_output_aliases={0: 0},
    )(x)


if __name__ == "__main__":
    # Small shapes consistent with the module: (batch, filter_size channels, time).
    key = jax.random.PRNGKey(0)
    B, C, T = 2, 192, 16
    x = jax.random.normal(key, (B, C, T), dtype=jnp.float32)

    y = posterior_encoder_forward(x)
    y = jax.block_until_ready(y)

    assert y.shape == x.shape and y.dtype == x.dtype
    assert bool(jnp.array_equal(y, x))
    print("KERNEL_OK")
</pallas_src>

<mosaic_0001>
module attributes {stable_mosaic.version = 11 : i64} {
  func.func @_identity_alias_kernel(%arg0: memref<2x192x16xf32, #tpu.memory_space<any>>, %arg1: memref<2x192x16xf32, #tpu.memory_space<any>>, %arg2: memref<1xi32, #tpu.memory_space<smem>>) attributes {dimension_semantics = [], scalar_prefetch = 0 : i64, scratch_operands = 1 : i64, tpu.core_type = #tpu.core_type<tc>} {
    %c1_i32 = arith.constant 1 : i32
    %c0 = arith.constant 0 : index
    %0 = memref.load %arg2[%c0] : memref<1xi32, #tpu.memory_space<smem>>
    memref.store %c1_i32, %arg2[%c0] : memref<1xi32, #tpu.memory_space<smem>>
    return
  }
}

</mosaic_0001>

<bundles_post_ra>
// kernel: tpu_custom_call.1
= control target key start
LH: loop header
LB: loop body
LE: loop exit
PB: predicated region body
PF: predicated region fallthrough
CT: control target
= control target key end

     0   :  { %s18_s0 = inlined_call_operand.vmem [shape: f32[2,192,16], index: 0, kind: input, shape index: {}, may-alias: {0,1}]   ;;  %s19_s1 = inlined_call_operand.vmem [shape: f32[2,192,16], index: 1, kind: output, shape index: {}, may-alias: {0,1}]  }

</bundles_post_ra>
